<compile_context>
chip_gen: v7x
topology: tpu7x:2x2x1
jax: 0.10.0
libtpu: 0.0.40
codegen_flags: <defaults>
</compile_context>

<pallas_src>
import functools

import jax
import jax.numpy as jnp
from jax.experimental import pallas as pl
from jax.experimental.pallas import tpu as pltpu


def _mm_bias_kernel_single(x_ref, w_ref, b_ref, o_ref):
    # Whole K fits in one tile: no accumulator scratch, write result directly.
    acc = jnp.dot(x_ref[...], w_ref[...], preferred_element_type=jnp.float32)
    o_ref[...] = (acc + b_ref[...].astype(jnp.float32)).astype(o_ref.dtype)


def _mm_bias_kernel_acc(x_ref, w_ref, b_ref, o_ref, acc_ref, *, k_valid, tk):
    # K-tiled path (grid axis 2 is the reduction, >= 2 steps by construction).
    k = pl.program_id(2)
    nk = pl.num_programs(2)

    x = x_ref[...]
    w = w_ref[...]
    if k_valid % tk != 0:
        # Ragged last K tile: zero the out-of-bounds tail of BOTH operands so
        # undefined padding (even NaN/Inf) contributes exactly 0 to the dot.
        rem = k_valid - k * tk                       # >= tk on all but last step
        lane = jax.lax.broadcasted_iota(jnp.int32, x.shape, 1)
        x = jnp.where(lane < rem, x, jnp.zeros_like(x))
        sub = jax.lax.broadcasted_iota(jnp.int32, w.shape, 0)
        w = jnp.where(sub < rem, w, jnp.zeros_like(w))

    part = jnp.dot(x, w, preferred_element_type=jnp.float32)
    is_last = k == nk - 1

    @pl.when(k == 0)
    def _init():                                     # init by direct write
        acc_ref[...] = part

    @pl.when((k != 0) & jnp.logical_not(is_last))
    def _accum():
        acc_ref[...] += part

    @pl.when(is_last)
    def _finish():                                   # fold last partial + bias
        o_ref[...] = (acc_ref[...] + part
                      + b_ref[...].astype(jnp.float32)).astype(o_ref.dtype)


def _round_up(v, m):
    return (v + m - 1) // m * m


@functools.partial(
    jax.jit, static_argnames=("tm", "tn", "tk", "k_single_cap_bytes"))
def monotonic_linear(x, weight, bias, *, tm=512, tn=512, tk=512,
                     k_single_cap_bytes=10 * 1024 * 1024):
    """out = x @ |weight|.T + |bias|   (PyTorch F.linear semantics).

    x: (..., K), weight: (N, K) [PyTorch (out_features, in_features)], bias: (N,)
    """
    *lead, K = x.shape
    N, k_w = weight.shape
    assert K == k_w, "in_features mismatch"
    x2 = x.reshape(-1, K)
    M = x2.shape[0]

    # One-time wrapper pass over W: |W| fused into the (K, N) transpose.
    wt = jnp.abs(weight).T                           # (K, N)
    b2 = jnp.abs(bias).reshape(1, N)

    in_bytes = x2.dtype.itemsize
    w_bytes = wt.dtype.itemsize
    out_bytes = x2.dtype.itemsize

    # ---- M / N tiles -------------------------------------------------------
    TM = M if M <= tm else tm                        # full dim or mult-of-8 tile
    TN = N if N <= tn else tn                        # full dim or mult-of-128 tile
    # v7x shards "parallel" grid axes over 2 TensorCores: avoid a degenerate
    # 1x1 parallel grid by splitting M in two (harmless on 1-TC chips).
    if M <= tm and N <= tn and M >= 16:
        TM = _round_up(pl.cdiv(M, 2), 8)

    # ---- K tile: byte-based single-step threshold (safe vs v5e 16 MiB) -----
    def resident_bytes(tk_):
        return (2 * TM * tk_ * in_bytes              # double-buffered x tile
                + 2 * tk_ * TN * w_bytes             # double-buffered W tile
                + 2 * TM * TN * out_bytes            # double-buffered out tile
                + 2 * TN * w_bytes)                  # bias

    if K <= tk or resident_bytes(K) <= k_single_cap_bytes:
        TK, grid_k = K, 1
    else:
        TK = tk
        grid_k = pl.cdiv(K, TK)                      # >= 2 by construction

    grid_m = pl.cdiv(M, TM)
    grid_n = pl.cdiv(N, TN)

    cost = pl.CostEstimate(
        flops=2 * M * N * K,
        transcendentals=0,
        bytes_accessed=(grid_n * M * K * in_bytes    # x re-read per N tile
                        + grid_m * K * N * w_bytes   # W re-read per M tile
                        + grid_m * N * w_bytes       # bias re-read per M tile
                        + M * N * out_bytes),        # output written once
    )
    vmem_limit = 32 * 1024 * 1024                    # explicit; >= resident+headroom

    if grid_k == 1:
        out2 = pl.pallas_call(
            _mm_bias_kernel_single,
            out_shape=jax.ShapeDtypeStruct((M, N), x.dtype),
            grid_spec=pltpu.PrefetchScalarGridSpec(
                num_scalar_prefetch=0,
                grid=(grid_m, grid_n),
                in_specs=[
                    pl.BlockSpec((TM, TK), lambda i, j: (i, 0)),   # x tile
                    pl.BlockSpec((TK, TN), lambda i, j: (0, j)),   # |W|.T tile
                    pl.BlockSpec((1, TN), lambda i, j: (0, j)),    # |b| tile
                ],
                out_specs=pl.BlockSpec((TM, TN), lambda i, j: (i, j)),
            ),
            compiler_params=pltpu.CompilerParams(
                dimension_semantics=("parallel", "parallel"),
                vmem_limit_bytes=vmem_limit,
            ),
            cost_estimate=cost,
        )(x2, wt, b2)
    else:
        kernel = functools.partial(_mm_bias_kernel_acc, k_valid=K, tk=TK)
        out2 = pl.pallas_call(
            kernel,
            out_shape=jax.ShapeDtypeStruct((M, N), x.dtype),
            grid_spec=pltpu.PrefetchScalarGridSpec(
                num_scalar_prefetch=0,
                grid=(grid_m, grid_n, grid_k),
                in_specs=[
                    pl.BlockSpec((TM, TK), lambda i, j, k: (i, k)),  # x tile
                    pl.BlockSpec((TK, TN), lambda i, j, k: (k, j)),  # |W|.T tile
                    pl.BlockSpec((1, TN), lambda i, j, k: (0, j)),   # |b| tile
                ],
                out_specs=pl.BlockSpec((TM, TN), lambda i, j, k: (i, j)),
                scratch_shapes=[pltpu.VMEM((TM, TN), jnp.float32)],
            ),
            compiler_params=pltpu.CompilerParams(
                dimension_semantics=("parallel", "parallel", "arbitrary"),
                vmem_limit_bytes=vmem_limit,
            ),
            cost_estimate=cost,
        )(x2, wt, b2)

    return out2.reshape(*lead, N)


if __name__ == "__main__":
    key = jax.random.PRNGKey(0)
    kx, kw, kb, kx2, kw2, kb2 = jax.random.split(key, 6)

    # --- test 1: small shapes consistent with nn.Linear on (batch, seq, hidden)
    B, S, IN_F, OUT_F = 2, 8, 32, 32
    x = jax.random.normal(kx, (B, S, IN_F), dtype=jnp.float32)
    w = jax.random.normal(kw, (OUT_F, IN_F), dtype=jnp.float32) * 0.1
    b = jax.random.normal(kb, (OUT_F,), dtype=jnp.float32) * 0.1

    out = monotonic_linear(x, w, b)
    jax.block_until_ready(out)

    ref = jnp.einsum("bsk,nk->bsn", x, jnp.abs(w)) + jnp.abs(b)
    assert out.shape == (B, S, OUT_F) and out.dtype == x.dtype
    assert jnp.allclose(out, ref, atol=1e-5, rtol=1e-5)

    # --- test 2: exercise the K-tiled accumulator path + ragged-K masking
    B2, S2, IN2, OUT2 = 4, 8, 300, 160
    x_big = jax.random.normal(kx2, (B2, S2, IN2), dtype=jnp.float32)
    w_big = jax.random.normal(kw2, (OUT2, IN2), dtype=jnp.float32) * 0.1
    b_big = jax.random.normal(kb2, (OUT2,), dtype=jnp.float32) * 0.1

    out_big = monotonic_linear(x_big, w_big, b_big,
                               tm=8, tk=128, k_single_cap_bytes=0)
    jax.block_until_ready(out_big)

    ref_big = jnp.einsum("bsk,nk->bsn", x_big, jnp.abs(w_big)) + jnp.abs(b_big)
    assert out_big.shape == (B2, S2, OUT2)
    assert jnp.allclose(out_big, ref_big, atol=1e-3, rtol=1e-3)

    print("KERNEL_OK")
</pallas_src>

<mosaic_0001>
module attributes {stable_mosaic.version = 11 : i64} {
  func.func @_mm_bias_kernel_single(%arg0: i32, %arg1: i32, %arg2: memref<8x32xf32, #tpu.memory_space<vmem>>, %arg3: memref<32x32xf32, #tpu.memory_space<vmem>>, %arg4: memref<1x32xf32, #tpu.memory_space<vmem>>, %arg5: memref<8x32xf32, #tpu.memory_space<vmem>>) attributes {dimension_semantics = [#tpu.dimension_semantics<parallel>, #tpu.dimension_semantics<parallel>], iteration_bounds = array<i64: 2, 1>, scalar_prefetch = 0 : i64, scratch_operands = 0 : i64, tpu.core_type = #tpu.core_type<tc>, window_params = [{transform_indices = @transform_0, window_bounds = array<i64: 8, 32>}, {transform_indices = @transform_1, window_bounds = array<i64: 32, 32>}, {transform_indices = @transform_2, window_bounds = array<i64: 1, 32>}, {transform_indices = @transform_3, window_bounds = array<i64: 8, 32>}]} {
    %c0 = arith.constant 0 : index
    %c0_0 = arith.constant 0 : index
    %0 = vector.load %arg2[%c0, %c0_0] : memref<8x32xf32, #tpu.memory_space<vmem>>, vector<8x32xf32>
    %c0_1 = arith.constant 0 : index
    %c0_2 = arith.constant 0 : index
    %1 = vector.load %arg3[%c0_1, %c0_2] : memref<32x32xf32, #tpu.memory_space<vmem>>, vector<32x32xf32>
    %cst = arith.constant dense<0.000000e+00> : vector<8x32xf32>
    %2 = tpu.matmul %0, %1, %cst {dimension_numbers = #tpu.dot_dimension_numbers<[1], [0], [0], [1], [0, 0, 1, 1], [], []>} : vector<8x32xf32>, vector<32x32xf32>, vector<8x32xf32> -> vector<8x32xf32>
    %c0_3 = arith.constant 0 : index
    %c0_4 = arith.constant 0 : index
    %3 = vector.load %arg4[%c0_3, %c0_4] : memref<1x32xf32, #tpu.memory_space<vmem>>, vector<1x32xf32>
    %4 = vector.broadcast %3 : vector<1x32xf32> to vector<8x32xf32>
    %5 = arith.addf %2, %4 : vector<8x32xf32>
    %c0_5 = arith.constant 0 : index
    %c0_6 = arith.constant 0 : index
    %6 = vector.load %arg5[%c0_5, %c0_6] : memref<8x32xf32, #tpu.memory_space<vmem>>, vector<8x32xf32>
    tpu.vector_store %arg5[%c0_5, %c0_6], %5 {strides = array<i32>} : memref<8x32xf32, #tpu.memory_space<vmem>>, vector<8x32xf32>,
    return
  }
  func.func @transform_0(%arg0: i32, %arg1: i32) -> (i32, i32) {
    %c0_i32 = arith.constant 0 : i32
    %c0_i32_0 = arith.constant 0 : i32
    return %arg0, %c0_i32 : i32, i32
  }
  func.func @transform_1(%arg0: i32, %arg1: i32) -> (i32, i32) {
    %c0_i32 = arith.constant 0 : i32
    %c0_i32_0 = arith.constant 0 : i32
    return %c0_i32, %arg1 : i32, i32
  }
  func.func @transform_2(%arg0: i32, %arg1: i32) -> (i32, i32) {
    %c0_i32 = arith.constant 0 : i32
    %c0_i32_0 = arith.constant 0 : i32
    return %c0_i32, %arg1 : i32, i32
  }
  func.func @transform_3(%arg0: i32, %arg1: i32) -> (i32, i32) {
    %c0_i32 = arith.constant 0 : i32
    return %arg0, %arg1 : i32, i32
  }
}

</mosaic_0001>

<bundles_post_ra>
// kernel: monotonic_linear.1
= control target key start
LH: loop header
LB: loop body
LE: loop exit
PB: predicated region body
PF: predicated region fallthrough
CT: control target
= control target key end

     0   :  { %8 = vsyncpa [#allocation3], 0  ;;  %s734_s0 = inlined_call_operand.vmem [shape: f32[16,32], index: 0, kind: input, shape index: {}]   ;;  %s735_s1 = inlined_call_operand.vmem [shape: f32[32,32], index: 1, kind: input, shape index: {}]   ;;  %s736_s2 = inlined_call_operand.vmem [shape: f32[1,32], index: 2, kind: input, shape index: {}]   ;;  %s737_s3 = inlined_call_operand.hbm [shape: f32[16,32], index: 3, kind: output, shape index: {}]  }
   0x1   :  { %10 = vsyncpa [#allocation3 + $0x1], 0  ;;  %s607_s12 = smov 0   ;;  %s609_s13 = smov 0  }
   0x2   :  { %s611_s14 = smov 0   ;;  %s613_s15 = smov 0  }
   0x3   :  { %s615_s16 = smov 0   ;;  %s617_s17 = smov 0  }
   0x4 LB: > { %s408_s18 = sadd.s32 4294967295, %s581_s17   ;;  %s409_s19 = sadd.s32 4294967294, %s581_s17   ;;  %s581_s17 = sphi %s617_s17, %s16_s17   ;;  %s577_s16 = sphi %s615_s16, %s744_s16   ;;  %s573_s15 = sphi %s613_s15, %s743_s15   ;;  %s569_s14 = sphi %s611_s14, %s742_s14   ;;  %s565_s13 = sphi %s609_s13, %s741_s13   ;;  %s561_s12 = sphi %s607_s12, %s740_s12  }
   0x5   : > { %s28_s20 = sadd.s32 1, %s577_s16  ;;  %s115_s21 = sadd.s32 1, %s569_s14 }
   0x6   : > { %p30_p0 = scmp.ge.s32.totalorder %s28_s20, 2  ;;  %p125_p1 = scmp.ne.s32.totalorder %s569_s14, %s565_s13 }
   0x7   : > { %p126_p2 = scmp.eq.s32.totalorder %s408_s18, 1  ;;  %p131_p3 = scmp.ne.s32.totalorder %s565_s13, %s561_s12 }
   0x8   : > { %s746_s20 = smov (%p30_p0, %s28_s20), 0  ;;  %p132_p5 = scmp.eq.s32.totalorder %s409_s19, 1 }
   0x9   : > { %p647_p4 = por %p126_p2, %p125_p1  ;;  %s110_s23 = ssub.s32 %s577_s16, %s746_s20 }
   0xa   : > { %p414_p6 = scmp.ge.s32.totalorder %s581_s17, 1  ;;  %p113_p7 = scmp.eq.s32.totalorder %s110_s23, 0 }
   0xb   : > { %p654_p8 = por %p132_p5, %p131_p3  ;;  %p170_p9 = scmp.lt.s32.totalorder %s581_s17, 3 }
   0xc   : > { %s660_s25 = scalar_select %p113_p7, %s569_s14, %s115_s21  }
   0xd   : > { %p171_p10 = pnand %p414_p6, %p170_p9 }
   0xe   : > { %v212_v0 = vld [vmem:[%s735_s1] sm:$0xff] (!%p171_p10)  ;;  %v213_v1 = vld [vmem:[%s735_s1 + $0x8] sm:$0xff] (!%p171_p10)  ;;  %v214_v2 = vld [vmem:[%s735_s1 + $0x10] sm:$0xff] (!%p171_p10)  ;;  %v583_v3 = vmov (!%p171_p10), 0.0|0.0   ;;  %vm584_vm0 = vmmov (!%p171_p10), 0   ;;  %v585_v6 = vmov (!%p171_p10), 0.0  }
   0xf   : > { %174 = sbr.rel (%p171_p10) target bundleno = 255 (0xff), region = 32  ;;  %439 = vmatprep.subr.bf16.mxu0 (!%p171_p10), %v583_v3  ;;  %v440_v4 = vpack.c.bf16 (!%p171_p10), %v213_v1, %v212_v0  ;;  %v215_v5 = vld [vmem:[%s735_s1 + $0x18] sm:$0xff] (!%p171_p10)  ;;  %436 = vmatprep.mubr.msk.f32.mxu0 (!%p171_p10), %vm584_vm0, %v585_v6  ;;  %p200_p11 = scmp.lt.s32.totalorder (!%p171_p10), %s573_s15, 1  ;;  %vm223_vm1 = vcmask (!%p171_p10), 261120   ;;  %v417_v9 = vld [vmem:[%s736_s2] ss:$0 sm:$0xff] (!%p171_p10) }
  0x10   : > { %v443_v7 = vpack.c.bf16 (!%p171_p10), %v215_v5, %v214_v2  ;;  %s197_s18 = sand.u32 (!%p171_p10), 1, %s565_s13   ;;  %s420_s26 = sshll.u32 (!%p171_p10), %s573_s15, 7 }
  0x11   : > { %441 = vmatpush3.bf16.msra.mxu0 (!%p171_p10), %v440_v4  ;;  %s415_s19 = sshll.u32 (!%p171_p10), %s197_s18, 3  ;;  %s687_s4 = scalar_lea.hbm (!%p171_p10), %s737_s3, %s420_s26 }
  0x12   : > { %442 = vmatprep.subr.bf16.mxu0 (!%p171_p10), %v583_v3  ;;  %s199_s27 = scalar_lea.vmem (!%p171_p10), [#allocation2], %s415_s19  ;;  %s299_s5 = scalar_lea.sflag (!%p171_p10), [#allocation3], %s197_s18 }
  0x13   : > { %s313_s28 = sshll.u32 (!%p171_p10), %s199_s27, 4  ;;  %s689_s28 = int_to_ptr.vmem [resolvable:$true] %s313_s28 }
  0x14   : > { %s503_s6 = scalar_lea.vmem (!%p171_p10), %s689_s28, 128 }
  0x15   : > { %444 = vmatpush3.bf16.msra.mxu0 (!%p171_p10), %v443_v7  ;;  %p504_p12 = scmp.ne.s32.totalorder (!%p171_p10), %s689_s28, %s503_s6 }
  0x16   : > { %s201_s7 = scalar_select %p200_p11, %s573_s15, 1 }
  0x17   : > { %p505_p13 = pnand %p504_p12, %p647_p4  ;;  %s586_s15 = smov [#allocation2]  }
  0x18   : > { %s416_s8 = sshll.u32 %s201_s7, 3  ;;  %s507_s7 = sshll.u32 %s586_s15, 4  ;;  %s508_s7 = int_to_ptr.vmem [resolvable:$false] %s507_s7 }
  0x19   : > { %s203_s11 = scalar_lea.vmem %s734_s0, %s416_s8  ;;  %p506_p0 = pneg %p505_p13 }
  0x1a   : > { %v211_v8 = vld [vmem:[%s203_s11] sm:$0xff]  ;;  %s509_s8 = scalar_lea.vmem %s508_s7, 256  ;;  %p510_p1 = scmp.lt.s32.totalorder %s689_s28, %s508_s7 }
  0x1b   : > { %437 = vmatmul.mubr.msk.f32.vlgmr.msra.gmra.mrb[0].mxu0 %vm223_vm1, %v211_v8  ;;  %p511_p2 = scmp.lt.s32.totalorder %s509_s8, %s503_s6 }
  0x1d   : > { %p512_p3 = por %p511_p2, %p510_p1 }
  0x1f   : > { %p513_p5 = pnand %p512_p3, %p506_p0 }
  0xee   : > { %v293_v10 = vpop.f32.mrb[0].mxu0 }
  0xef   : > { %v294_v11 = vadd.f32 %v417_v9, %v293_v10  ;;  %v438_v12 = vpop.f32.mrb[1].mxu0 }
  0xf1   : > { %297 = vst.msk [vmem:[%s199_s27] sm:$0xff] %vm223_vm1, %v294_v11 }
  0xf2   : > { %516 = shalt.err (!%p513_p5)
}
  0xf3   : > { %s517_s9 = scalar_lea.hbm %s687_s4, 128  ;;  %s521_s18 = scalar_lea.hbm %s737_s3, 256 }
  0xf4   : > { %p518_p6 = scmp.ne.s32.totalorder %s687_s4, %s517_s9  ;;  %p522_p10 = scmp.lt.u32.totalorder %s687_s4, %s737_s3 }
  0xf5   : > { %p523_p11 = scmp.lt.u32.totalorder %s521_s18, %s517_s9  ;;  %p525_p13 = scmp.lt.u32.totalorder %s517_s9, %s687_s4 }
  0xf6   : > { %p519_p7 = pnand %p518_p6, %p647_p4 }
  0xf7   : > { %p524_p12 = por %p523_p11, %p522_p10 }
  0xf8   : > { %p520_p9 = pneg %p519_p7 }
  0xf9   : > { %p526_p0 = por %p525_p13, %p524_p12 }
  0xfb   : > { %p527_p1 = pnand %p526_p0, %p520_p9 }
  0xfd   : > { %530 = shalt.err (!%p527_p1)
}
  0xfe   : > { %445 = dma.vmem_to_hbm [thread:$0]  (%p647_p4), %s689_s28, 128, %s687_s4, %s299_s5  }
  0xff PF: > { %p451_p2 = scmp.ge.s32.totalorder %s581_s17, 2  ;;  %s325_s23 = sand.u32 1, %s561_s12  }
 0x100   : > { %s326_s26 = scalar_lea.sflag [#allocation3], %s325_s23 }
 0x101   : > { %p448_p3 = pnand %p451_p2, %p654_p8 }
 0x103   : > { %556 = dma.done.wait (!%p448_p3), %s326_s26, 128  }
 0x104   : > { %558 = vsyncadd (!%p448_p3), %s326_s26, 4294967168  ;;  %s16_s17 = sadd.s32 1, %s581_s17   ;;  %s740_s12 = smov %s565_s13 }
 0x105   : > { %p13_p5 = scmp.ge.s32.totalorder %s16_s17, 4   ;;  %s741_s13 = smov %s569_s14 }
 0x106   : > { %s742_s14 = smov %s660_s25  ;;  %s743_s15 = smov %s577_s16 }
 0x107   : > { %s744_s16 = smov %s746_s20  ;;  %15 = sbr.rel (!%p13_p5) target bundleno = 4 (0x4), region = 73 }
 0x10e   :  { %331 = vsyncpa [#allocation3], 1 }
 0x10f   :  { %333 = vsyncpa [#allocation3 + $0x1], 1 }

</bundles_post_ra>
